<compile_context>
chip_gen: v6e
topology: v6e:2x2x1
jax: 0.10.0
libtpu: 0.0.40
codegen_flags: <defaults>
</compile_context>

<pallas_src>
import math

import jax
import jax.numpy as jnp
from jax.experimental import pallas as pl
from jax.experimental.pallas import tpu as pltpu

D_K = 2  # hidden_dim of the module (weights are 2x2)

# Deterministic parameters hard-coded in the module's __init__ (baked into the
# kernel as scalar constants -> no weight DMAs at all).
WQ00, WQ01 = 0.0798, 0.4151
WQ10, WQ11 = -0.0994, 0.1561
BQ0, BQ1 = -0.2548, 0.3911
WK00, WK01 = -0.3068, -0.4800
WK10, WK11 = -0.4578, -0.1488
BK0, BK1 = 0.3407, 0.4099
# NOTE: linear_value_{weight,bias} exist in __init__ but are never used in
# forward (proj_values=False), so they are intentionally omitted.

_INV_SQRT_DK = 1.0 / math.sqrt(D_K)


def attention_kernel(q_ref, k_ref, ctx_ref):
    # q_ref: (B, 2) decoder query;  k_ref: (B, 4) = [h00 h01 | h10 h11]
    q = q_ref[...]
    k = k_ref[...]
    q0 = q[:, 0:1]
    q1 = q[:, 1:2]
    h00 = k[:, 0:1]   # encoder hidden, key position 0 (also the value)
    h01 = k[:, 1:2]
    h10 = k[:, 2:3]   # encoder hidden, key position 1 (also the value)
    h11 = k[:, 3:4]

    # nn.Linear semantics (y_j = sum_i x_i * W[j][i] + b[j]) done on the VPU.
    qp0 = q0 * WQ00 + q1 * WQ01 + BQ0
    qp1 = q0 * WQ10 + q1 * WQ11 + BQ1

    kp00 = h00 * WK00 + h01 * WK01 + BK0
    kp01 = h00 * WK10 + h01 * WK11 + BK1
    kp10 = h10 * WK00 + h11 * WK01 + BK0
    kp11 = h10 * WK10 + h11 * WK11 + BK1

    # scaled dot-product similarity scores, one per key position
    s0 = (qp0 * kp00 + qp1 * kp01) * _INV_SQRT_DK
    s1 = (qp0 * kp10 + qp1 * kp11) * _INV_SQRT_DK

    # 2-way softmax as a sigmoid: a0 = e^{s0}/(e^{s0}+e^{s1}) = 1/(1+e^{s1-s0})
    a0 = 1.0 / (1.0 + jnp.exp(s1 - s0))
    a1 = 1.0 - a0

    # proj_values=False -> values are the raw encoder hidden states (keys)
    c0 = a0 * h00 + a1 * h10
    c1 = a0 * h01 + a1 * h11
    ctx_ref[...] = jnp.concatenate([c0, c1], axis=-1)   # (B, 2)


def attention_forward(query, keys):
    """query: (B, 1, 2) float32;  keys: (B, 2, 2) float32  ->  (B, 1, 2)."""
    B = query.shape[0]
    # Row-major reshapes are no-ops; no host-side packing copy.
    q2 = query.reshape(B, 2).astype(jnp.float32)
    k4 = keys.reshape(B, 4).astype(jnp.float32)

    vmem_spec = pl.BlockSpec(memory_space=pltpu.MemorySpace.VMEM)
    ctx = pl.pallas_call(
        attention_kernel,
        out_shape=jax.ShapeDtypeStruct((B, 2), jnp.float32),
        in_specs=[vmem_spec, vmem_spec],
        out_specs=vmem_spec,
    )(q2, k4)
    return ctx.reshape(B, 1, 2)


def attention_reference(query, keys):
    """Pure-JAX reference mirroring the PyTorch forward, for validation."""
    wq = jnp.array([[WQ00, WQ01], [WQ10, WQ11]], dtype=jnp.float32)
    bq = jnp.array([BQ0, BQ1], dtype=jnp.float32)
    wk = jnp.array([[WK00, WK01], [WK10, WK11]], dtype=jnp.float32)
    bk = jnp.array([BK0, BK1], dtype=jnp.float32)

    q = query[:, 0, :]                                   # (B, 2)
    qp = q @ wq.T + bq                                   # (B, 2)
    kp = jnp.einsum("bsd,ed->bse", keys, wk) + bk        # (B, 2, 2)
    scores = jnp.einsum("bd,bsd->bs", qp, kp) / math.sqrt(D_K)
    alphas = jax.nn.softmax(scores, axis=-1)             # (B, 2)
    ctx = jnp.einsum("bs,bsd->bd", alphas, keys)         # (B, 2)
    return ctx[:, None, :]


if __name__ == "__main__":
    B = 16  # batch size hard-coded by the module (.view(16, 1, 2))
    key = jax.random.PRNGKey(0)
    kq, kk = jax.random.split(key)
    query = jax.random.normal(kq, (B, 1, 2), dtype=jnp.float32)
    keys = jax.random.normal(kk, (B, 2, 2), dtype=jnp.float32)

    out = attention_forward(query, keys)
    out = jax.block_until_ready(out)

    ref = attention_reference(query, keys)
    assert out.shape == (B, 1, 2), out.shape
    assert jnp.allclose(out, ref, atol=1e-5, rtol=1e-5), (
        "Pallas kernel output mismatch vs. reference"
    )
    print("KERNEL_OK")
</pallas_src>

<mosaic_0001>
module attributes {stable_mosaic.version = 11 : i64} {
  func.func @attention_kernel(%arg0: memref<16x2xf32, #tpu.memory_space<vmem>>, %arg1: memref<16x4xf32, #tpu.memory_space<vmem>>, %arg2: memref<16x2xf32, #tpu.memory_space<vmem>>) attributes {dimension_semantics = [], scalar_prefetch = 0 : i64, scratch_operands = 0 : i64, tpu.core_type = #tpu.core_type<tc>} {
    %c0 = arith.constant 0 : index
    %c0_0 = arith.constant 0 : index
    %0 = vector.load %arg0[%c0, %c0_0] : memref<16x2xf32, #tpu.memory_space<vmem>>, vector<16x2xf32>
    %c0_1 = arith.constant 0 : index
    %c0_2 = arith.constant 0 : index
    %1 = vector.load %arg1[%c0_1, %c0_2] : memref<16x4xf32, #tpu.memory_space<vmem>>, vector<16x4xf32>
    %2 = vector.extract_strided_slice %0 {offsets = [0, 0], sizes = [16, 1], strides = [1, 1]} : vector<16x2xf32> to vector<16x1xf32>
    %3 = vector.extract_strided_slice %0 {offsets = [0, 1], sizes = [16, 1], strides = [1, 1]} : vector<16x2xf32> to vector<16x1xf32>
    %4 = vector.extract_strided_slice %1 {offsets = [0, 0], sizes = [16, 1], strides = [1, 1]} : vector<16x4xf32> to vector<16x1xf32>
    %5 = vector.extract_strided_slice %1 {offsets = [0, 1], sizes = [16, 1], strides = [1, 1]} : vector<16x4xf32> to vector<16x1xf32>
    %6 = vector.extract_strided_slice %1 {offsets = [0, 2], sizes = [16, 1], strides = [1, 1]} : vector<16x4xf32> to vector<16x1xf32>
    %7 = vector.extract_strided_slice %1 {offsets = [0, 3], sizes = [16, 1], strides = [1, 1]} : vector<16x4xf32> to vector<16x1xf32>
    %cst = arith.constant 7.980000e-02 : f32
    %8 = vector.broadcast %cst : f32 to vector<16x1xf32>
    %9 = arith.mulf %2, %8 : vector<16x1xf32>
    %cst_3 = arith.constant 4.151000e-01 : f32
    %10 = vector.broadcast %cst_3 : f32 to vector<16x1xf32>
    %11 = arith.mulf %3, %10 : vector<16x1xf32>
    %12 = arith.addf %9, %11 : vector<16x1xf32>
    %cst_4 = arith.constant -2.548000e-01 : f32
    %13 = vector.broadcast %cst_4 : f32 to vector<16x1xf32>
    %14 = arith.addf %12, %13 : vector<16x1xf32>
    %cst_5 = arith.constant -0.0993999987 : f32
    %15 = vector.broadcast %cst_5 : f32 to vector<16x1xf32>
    %16 = arith.mulf %2, %15 : vector<16x1xf32>
    %cst_6 = arith.constant 1.561000e-01 : f32
    %17 = vector.broadcast %cst_6 : f32 to vector<16x1xf32>
    %18 = arith.mulf %3, %17 : vector<16x1xf32>
    %19 = arith.addf %16, %18 : vector<16x1xf32>
    %cst_7 = arith.constant 3.911000e-01 : f32
    %20 = vector.broadcast %cst_7 : f32 to vector<16x1xf32>
    %21 = arith.addf %19, %20 : vector<16x1xf32>
    %cst_8 = arith.constant -3.068000e-01 : f32
    %22 = vector.broadcast %cst_8 : f32 to vector<16x1xf32>
    %23 = arith.mulf %4, %22 : vector<16x1xf32>
    %cst_9 = arith.constant -4.800000e-01 : f32
    %24 = vector.broadcast %cst_9 : f32 to vector<16x1xf32>
    %25 = arith.mulf %5, %24 : vector<16x1xf32>
    %26 = arith.addf %23, %25 : vector<16x1xf32>
    %cst_10 = arith.constant 3.407000e-01 : f32
    %27 = vector.broadcast %cst_10 : f32 to vector<16x1xf32>
    %28 = arith.addf %26, %27 : vector<16x1xf32>
    %cst_11 = arith.constant -4.578000e-01 : f32
    %29 = vector.broadcast %cst_11 : f32 to vector<16x1xf32>
    %30 = arith.mulf %4, %29 : vector<16x1xf32>
    %cst_12 = arith.constant -1.488000e-01 : f32
    %31 = vector.broadcast %cst_12 : f32 to vector<16x1xf32>
    %32 = arith.mulf %5, %31 : vector<16x1xf32>
    %33 = arith.addf %30, %32 : vector<16x1xf32>
    %cst_13 = arith.constant 4.099000e-01 : f32
    %34 = vector.broadcast %cst_13 : f32 to vector<16x1xf32>
    %35 = arith.addf %33, %34 : vector<16x1xf32>
    %cst_14 = arith.constant -3.068000e-01 : f32
    %36 = vector.broadcast %cst_14 : f32 to vector<16x1xf32>
    %37 = arith.mulf %6, %36 : vector<16x1xf32>
    %cst_15 = arith.constant -4.800000e-01 : f32
    %38 = vector.broadcast %cst_15 : f32 to vector<16x1xf32>
    %39 = arith.mulf %7, %38 : vector<16x1xf32>
    %40 = arith.addf %37, %39 : vector<16x1xf32>
    %cst_16 = arith.constant 3.407000e-01 : f32
    %41 = vector.broadcast %cst_16 : f32 to vector<16x1xf32>
    %42 = arith.addf %40, %41 : vector<16x1xf32>
    %cst_17 = arith.constant -4.578000e-01 : f32
    %43 = vector.broadcast %cst_17 : f32 to vector<16x1xf32>
    %44 = arith.mulf %6, %43 : vector<16x1xf32>
    %cst_18 = arith.constant -1.488000e-01 : f32
    %45 = vector.broadcast %cst_18 : f32 to vector<16x1xf32>
    %46 = arith.mulf %7, %45 : vector<16x1xf32>
    %47 = arith.addf %44, %46 : vector<16x1xf32>
    %cst_19 = arith.constant 4.099000e-01 : f32
    %48 = vector.broadcast %cst_19 : f32 to vector<16x1xf32>
    %49 = arith.addf %47, %48 : vector<16x1xf32>
    %50 = arith.mulf %14, %28 : vector<16x1xf32>
    %51 = arith.mulf %21, %35 : vector<16x1xf32>
    %52 = arith.addf %50, %51 : vector<16x1xf32>
    %cst_20 = arith.constant 0.707106769 : f32
    %53 = vector.broadcast %cst_20 : f32 to vector<16x1xf32>
    %54 = arith.mulf %52, %53 : vector<16x1xf32>
    %55 = arith.mulf %14, %42 : vector<16x1xf32>
    %56 = arith.mulf %21, %49 : vector<16x1xf32>
    %57 = arith.addf %55, %56 : vector<16x1xf32>
    %cst_21 = arith.constant 0.707106769 : f32
    %58 = vector.broadcast %cst_21 : f32 to vector<16x1xf32>
    %59 = arith.mulf %57, %58 : vector<16x1xf32>
    %60 = arith.subf %59, %54 : vector<16x1xf32>
    %61 = math.exp %60 : vector<16x1xf32>
    %cst_22 = arith.constant 1.000000e+00 : f32
    %62 = vector.broadcast %cst_22 : f32 to vector<16x1xf32>
    %63 = arith.addf %62, %61 : vector<16x1xf32>
    %cst_23 = arith.constant 1.000000e+00 : f32
    %64 = vector.broadcast %cst_23 : f32 to vector<16x1xf32>
    %65 = arith.divf %64, %63 : vector<16x1xf32>
    %cst_24 = arith.constant 1.000000e+00 : f32
    %66 = vector.broadcast %cst_24 : f32 to vector<16x1xf32>
    %67 = arith.subf %66, %65 : vector<16x1xf32>
    %68 = arith.mulf %65, %4 : vector<16x1xf32>
    %69 = arith.mulf %67, %6 : vector<16x1xf32>
    %70 = arith.addf %68, %69 : vector<16x1xf32>
    %71 = arith.mulf %65, %5 : vector<16x1xf32>
    %72 = arith.mulf %67, %7 : vector<16x1xf32>
    %73 = arith.addf %71, %72 : vector<16x1xf32>
    %74 = tpu.concatenate %70, %73 in 1 : vector<16x1xf32>, vector<16x1xf32> -> vector<16x2xf32>
    %c0_25 = arith.constant 0 : index
    %c0_26 = arith.constant 0 : index
    %75 = vector.load %arg2[%c0_25, %c0_26] : memref<16x2xf32, #tpu.memory_space<vmem>>, vector<16x2xf32>
    tpu.vector_store %arg2[%c0_25, %c0_26], %74 {strides = array<i32>} : memref<16x2xf32, #tpu.memory_space<vmem>>, vector<16x2xf32>,
    return
  }
}

</mosaic_0001>

<bundles_post_ra>
// kernel: tpu_custom_call.1
= control target key start
LH: loop header
LB: loop body
LE: loop exit
PB: predicated region body
PF: predicated region fallthrough
CT: control target
= control target key end

     0   :  { %s187_s13 = smov 127   ;;  %s189_s17 = smov 125   ;;  %vm165_vm0 = vcmask 7168   ;;  %vm168_vm1 = vcmask 15360   ;;  %s260_s1 = inlined_call_operand.vmem [shape: f32[16,4], index: 1, kind: input, shape index: {}]   ;;  %s261_s0 = inlined_call_operand.vmem [shape: f32[16,2], index: 0, kind: input, shape index: {}]   ;;  %s262_s2 = inlined_call_operand.vmem [shape: f32[16,2], index: 2, kind: output, shape index: {}]  }
   0x1   :  { %v209_v0 = vld [vmem:[%s260_s1] sm:$0xff]  ;;  %v214_v1 = vld [vmem:[%s260_s1 + $0x8] sm:$0xff]  ;;  %s190_s18 = smov 1  }
   0x2   :  { %v65_v2 = vmul.f32 -0.1488, %v209_v0  ;;  %v49_v3 = vmul.f32 -0.48, %v209_v0  ;;  %v66_v4 = vmul.f32 -0.1488, %v214_v1 }
   0x3   :  { %v50_v5 = vmul.f32 -0.48, %v214_v1  ;;  %v12_v6 = vld [vmem:[%s261_s0 + $0x8] sm:$0xff]  ;;  %v11_v7 = vld [vmem:[%s261_s0] sm:$0xff]  ;;  %v63_v12 = vmul.f32 -0.4578, %v209_v0 }
   0x4   :  { %69 = vrot.lane.b32.xlu1 %v65_v2, %s187_s13  ;;  %53 = vrot.lane.b32.xlu0 %v49_v3, %s187_s13  ;;  %v18_v8 = vmul.f32 0.4151, %v12_v6  ;;  %v17_v9 = vmul.f32 0.4151, %v11_v7  ;;  %v34_v10 = vmul.f32 0.1561, %v12_v6 }
   0x5   :  { %v33_v11 = vmul.f32 0.1561, %v11_v7  ;;  %v47_v13 = vmul.f32 -0.3068, %v209_v0  ;;  %v64_v18 = vmul.f32 -0.4578, %v214_v1 }
   0x6   :  { %v48_v19 = vmul.f32 -0.3068, %v214_v1  ;;  %v16_v23 = vmul.f32 0.0798, %v12_v6  ;;  %s188_s0 = smov 126  }
   0x7   :  { %v15_v27 = vmul.f32 0.0798, %v11_v7  ;;  %v32_v31 = vmul.f32 -0.0994, %v12_v6  ;;  %v31_v35 = vmul.f32 -0.0994, %v11_v7 }
   0x8   :  { %71 = vrot.lane.b32.xlu1 %v66_v4, %s187_s13  ;;  %55 = vrot.lane.b32.xlu0 %v50_v5, %s187_s13 }
   0xc   :  { %23 = vrot.lane.b32.xlu1 %v18_v8, %s187_s13  ;;  %21 = vrot.lane.b32.xlu0 %v17_v9, %s187_s13 }
  0x10   :  { %39 = vrot.lane.b32.xlu1 %v34_v10, %s187_s13  ;;  %37 = vrot.lane.b32.xlu0 %v33_v11, %s187_s13 }
  0x76   :  { %v70_v14 = vpop.permute.xlu1 %69  ;;  %v54_v15 = vpop.permute.xlu0 %53 }
  0x77   :  { %v75_v16 = vadd.f32 %v70_v14, %v63_v12  ;;  %v59_v17 = vadd.f32 %v54_v15, %v47_v13 }
  0x79   :  { %v61_v20 = vadd.f32 0.3407, %v59_v17  ;;  %v77_v24 = vadd.f32 0.4099, %v75_v16 }
  0x7a   :  { %v72_v21 = vpop.permute.xlu1 %71  ;;  %v56_v22 = vpop.permute.xlu0 %55 }
  0x7b   :  { %v76_v25 = vadd.f32 %v72_v21, %v64_v18  ;;  %v60_v26 = vadd.f32 %v56_v22, %v48_v19  ;;  %89 = vrot.lane.b32.xlu0 %v61_v20, %s188_s0 }
  0x7d   :  { %v62_v28 = vadd.f32 0.3407, %v60_v26  ;;  %v78_v32 = vadd.f32 0.4099, %v76_v25 }
  0x7e   :  { %v24_v29 = vpop.permute.xlu1 %23  ;;  %v22_v30 = vpop.permute.xlu0 %21 }
  0x7f   :  { %v28_v33 = vadd.f32 %v24_v29, %v16_v23  ;;  %v27_v34 = vadd.f32 %v22_v30, %v15_v27  ;;  %91 = vrot.lane.b32.xlu1 %v62_v28, %s188_s0  ;;  %99 = vrot.lane.b32.xlu0 %v77_v24, %s188_s0 }
  0x81   :  { %v30_v36 = vadd.f32 -0.2548, %v28_v33  ;;  %v29_v37 = vadd.f32 -0.2548, %v27_v34 }
  0x82   :  { %v40_v38 = vpop.permute.xlu1 %39  ;;  %v38_v39 = vpop.permute.xlu0 %37 }
  0x83   :  { %v80_v40 = vmul.f32 %v62_v28, %v30_v36  ;;  %v79_v41 = vmul.f32 %v61_v20, %v29_v37  ;;  %v44_v42 = vadd.f32 %v40_v38, %v32_v31  ;;  %v43_v43 = vadd.f32 %v38_v39, %v31_v35  ;;  %101 = vrot.lane.b32.xlu1 %v78_v32, %s188_s0 }
  0x84   :  { %139 = vrot.lane.b32.xlu0 %v209_v0, %s187_s13 }
  0x85   :  { %v46_v44 = vadd.f32 0.3911, %v44_v42  ;;  %v45_v45 = vadd.f32 0.3911, %v43_v43 }
  0x87   :  { %v82_v46 = vmul.f32 %v78_v32, %v46_v44  ;;  %v81_v47 = vmul.f32 %v77_v24, %v45_v45  ;;  %141 = vrot.lane.b32.xlu1 %v214_v1, %s187_s13 }
  0x88   :  { %147 = vrot.lane.b32.xlu0 %v209_v0, %s189_s17 }
  0x89   :  { %v84_v48 = vadd.f32 %v82_v46, %v80_v40  ;;  %v83_v49 = vadd.f32 %v81_v47, %v79_v41 }
  0x8b   :  { %149 = vrot.lane.b32.xlu1 %v214_v1, %s189_s17  ;;  %v85_v57 = vmul.f32 0.70710677, %v83_v49  ;;  %v86_v63 = vmul.f32 0.70710677, %v84_v48 }
  0x8c   :  { %129 = vrot.lane.b32.xlu0 %v209_v0, %s188_s0 }
  0x8f   :  { %131 = vrot.lane.b32.xlu1 %v214_v1, %s188_s0 }
  0xed   :  { %v90_v50 = vpop.permute.xlu0 %89 }
  0xee   :  { %v95_v53 = vmul.f32 %v90_v50, %v29_v37 }
  0xf1   :  { %v92_v51 = vpop.permute.xlu1 %91  ;;  %v100_v52 = vpop.permute.xlu0 %99 }
  0xf2   :  { %v105_v54 = vmul.f32 %v100_v52, %v45_v45  ;;  %v96_v58 = vmul.f32 %v92_v51, %v30_v36 }
  0xf4   :  { %v107_v55 = vadd.f32 %v105_v54, %v95_v53 }
  0xf5   :  { %v102_v56 = vpop.permute.xlu1 %101 }
  0xf6   :  { %v109_v59 = vmul.f32 0.70710677, %v107_v55  ;;  %v106_v60 = vmul.f32 %v102_v56, %v46_v44  ;;  %v140_v9 = vpop.permute.xlu0 %139 }
  0xf8   :  { %v111_v61 = vsub.f32 %v109_v59, %v85_v57  ;;  %v108_v62 = vadd.f32 %v106_v60, %v96_v58 }
  0xf9   :  { %v142_v11 = vpop.permute.xlu1 %141 }
  0xfa   :  { %v113_v2 = vmul.f32 1.442695, %v111_v61  ;;  %v110_v3 = vmul.f32 0.70710677, %v108_v62  ;;  %v148_v12 = vpop.permute.xlu0 %147 }
  0xfc   :  { %179 = vpow2.f32 %v113_v2  ;;  %v112_v4 = vsub.f32 %v110_v3, %v86_v63 }
  0xfd   :  { %v150_v13 = vpop.permute.xlu1 %149 }
  0xfe   :  { %v115_v5 = vmul.f32 1.442695, %v112_v4  ;;  %v130_v15 = vpop.permute.xlu0 %129 }
 0x100   :  { %181 = vpow2.f32 %v115_v5 }
 0x101   :  { %v132_v22 = vpop.permute.xlu1 %131 }
 0x109   :  { %v180_v6 = vpop.eup %179 }
 0x10a   :  { %v117_v7 = vadd.f32 1.0, %v180_v6 }
 0x10c   :  { %183 = vrcp.f32 %v117_v7 }
 0x10d   :  { %v182_v8 = vpop.eup %181 }
 0x10e   :  { %v118_v10 = vadd.f32 1.0, %v182_v8 }
 0x110   :  { %185 = vrcp.f32 %v118_v10 }
 0x119   :  { %v184_v14 = vpop.eup %183 }
 0x11a   :  { %v123_v16 = vsub.f32 1.0, %v184_v14  ;;  %v145_v17 = vmul.f32 %v184_v14, %v140_v9  ;;  %v125_v19 = vmul.f32 %v184_v14, %v209_v0 }
 0x11c   :  { %v153_v18 = vmul.f32 %v148_v12, %v123_v16  ;;  %v135_v20 = vmul.f32 %v130_v15, %v123_v16 }
 0x11d   :  { %v186_v21 = vpop.eup %185 }
 0x11e   :  { %v155_v23 = vadd.f32 %v153_v18, %v145_v17  ;;  %v124_v24 = vsub.f32 1.0, %v186_v21  ;;  %v137_v25 = vadd.f32 %v135_v20, %v125_v19  ;;  %v146_v26 = vmul.f32 %v186_v21, %v142_v11 }
 0x11f   :  { %v126_v28 = vmul.f32 %v186_v21, %v214_v1 }
 0x120   :  { %v154_v27 = vmul.f32 %v150_v13, %v124_v24  ;;  %v136_v29 = vmul.f32 %v132_v22, %v124_v24  ;;  %159 = vrot.lane.b32.xlu0 %v155_v23, %s190_s18 }
 0x122   :  { %v156_v30 = vadd.f32 %v154_v27, %v146_v26  ;;  %v138_v31 = vadd.f32 %v136_v29, %v126_v28 }
 0x124   :  { %161 = vrot.lane.b32.xlu1 %v156_v30, %s190_s18 }
 0x192   :  { %v160_v32 = vpop.permute.xlu0 %159 }
 0x193   :  { %v166_v0 = vsel %vm165_vm0, %v137_v25, %v160_v32 }
 0x194   :  { %169 = vst.msk [vmem:[%s262_s2] sm:$0xff] %vm168_vm1, %v166_v0 }
 0x196   :  { %v162_v33 = vpop.permute.xlu1 %161 }
 0x197   :  { %v167_v34 = vsel %vm165_vm0, %v138_v31, %v162_v33 }
 0x198   :  { %170 = vst.msk [vmem:[%s262_s2 + $0x8] sm:$0xff] %vm168_vm1, %v167_v34 }

</bundles_post_ra>
